<compile_context>
chip_gen: v7x
topology: tpu7x:2x2x1
jax: 0.10.0
libtpu: 0.0.40
codegen_flags: <defaults>
</compile_context>

<pallas_src>
import jax
import jax.numpy as jnp
import numpy as np
from jax.experimental import pallas as pl
from jax.experimental.pallas import tpu as pltpu

_BN_EPS = 1e-5
_LANE = 128


def _round_up(x, m):
    return ((x + m - 1) // m) * m


def _pad2d(a, rows, cols):
    r, c = a.shape
    if r == rows and c == cols:
        return a
    return jnp.pad(a, ((0, rows - r), (0, cols - c)))


# ----------------------------- Pallas kernel ------------------------------ #
def _make_fused_kernel(apply_relu: bool, kind: str):
    """K-tiled matmul + folded-BN bias [+1x1 shortcut matmul | +residual] [+ReLU].

    Grid = (M tiles, K tiles); the K axis is a reduction carried in an f32 VMEM
    accumulator.  Epilogue (bias / shortcut / residual / ReLU / store) runs on
    the last K step only.
    """

    def kernel(*refs):
        if kind == "matmul":
            x_ref, w_ref, b_ref, xs_ref, ws_ref, o_ref, acc_ref = refs
        elif kind == "residual":
            x_ref, w_ref, b_ref, r_ref, o_ref, acc_ref = refs
        else:
            x_ref, w_ref, b_ref, o_ref, acc_ref = refs

        k = pl.program_id(1)

        @pl.when(k == 0)
        def _init():
            if kind == "matmul":
                # 1x1 projection shortcut seeds the accumulator (fused, no
                # separate pallas_call / HBM round trip for the shortcut).
                acc_ref[...] = jnp.dot(xs_ref[...], ws_ref[...],
                                       preferred_element_type=jnp.float32)
            else:
                acc_ref[...] = jnp.zeros_like(acc_ref)

        acc_ref[...] += jnp.dot(x_ref[...], w_ref[...],
                                preferred_element_type=jnp.float32)

        @pl.when(k == pl.num_programs(1) - 1)
        def _epilogue():
            out = acc_ref[...] + b_ref[...]
            if kind == "residual":
                out = out + r_ref[...].astype(jnp.float32)
            if apply_relu:
                out = jnp.maximum(out, 0.0)
            o_ref[...] = out.astype(o_ref.dtype)

    return kernel


def fused_conv_matmul(x2d, w2d, bias, *, relu, xs=None, ws=None, residual=None,
                      out_dtype=jnp.float32):
    """y = act(x2d @ w2d + bias [+ xs @ ws | + residual]); bf16 MXU, f32 acc.

    x2d:      (M, K)    im2col rows (cast to bf16)
    w2d:      (K, Cout) BN-scale-folded weights
    bias:     (Cout,)   folded BN bias (kept f32)
    xs, ws:   optional 1x1-projection shortcut operands (M, Cin), (Cin, Cout)
    residual: optional identity residual (M, Cout)
    Returns (M, Cout) in out_dtype.
    """
    M, K = x2d.shape
    Cout = w2d.shape[1]
    Coutp = _round_up(Cout, _LANE)            # lane-dense output stores

    # K tiling ("arbitrary" reduction axis); all blocks stay (8,128)-aligned.
    if K <= 512:
        tk = _round_up(K, _LANE)
        Kp = tk
    else:
        tk = 512
        Kp = _round_up(K, tk)

    # Large M tiles amortize per-grid-step overhead; pad M instead of falling
    # back to one whole-array block.
    tm = 512 if M >= 512 else _round_up(M, 8)
    Mp = _round_up(M, tm)

    x_p = _pad2d(x2d, Mp, Kp).astype(jnp.bfloat16)
    w_p = _pad2d(w2d, Kp, Coutp).astype(jnp.bfloat16)
    b_p = _pad2d(bias.reshape(1, Cout).astype(jnp.float32), 1, Coutp)

    in_specs = [
        pl.BlockSpec((tm, tk), lambda i, k: (i, k)),        # im2col rows
        pl.BlockSpec((tk, Coutp), lambda i, k: (k, 0)),     # BN-scaled weights
        pl.BlockSpec((1, Coutp), lambda i, k: (0, 0)),      # folded BN bias
    ]
    args = [x_p, w_p, b_p]

    out_itemsize = np.dtype(out_dtype).itemsize
    vmem_est = (2 * tm * tk * 2 + 2 * tk * Coutp * 2 + 2 * Coutp * 4
                + 2 * tm * Coutp * out_itemsize + tm * Coutp * 4)

    if xs is not None:
        kind = "matmul"
        Cin = xs.shape[1]
        Cinp = _round_up(Cin, _LANE)
        xs_p = _pad2d(xs, Mp, Cinp).astype(jnp.bfloat16)
        ws_p = _pad2d(ws, Cinp, Coutp).astype(jnp.bfloat16)
        in_specs += [
            pl.BlockSpec((tm, Cinp), lambda i, k: (i, 0)),     # strided input
            pl.BlockSpec((Cinp, Coutp), lambda i, k: (0, 0)),  # 1x1 weights
        ]
        args += [xs_p, ws_p]
        vmem_est += 2 * tm * Cinp * 2 + 2 * Cinp * Coutp * 2
    elif residual is not None:
        kind = "residual"
        r_p = _pad2d(residual, Mp, Coutp).astype(jnp.bfloat16)
        in_specs.append(pl.BlockSpec((tm, Coutp), lambda i, k: (i, 0)))
        args.append(r_p)
        vmem_est += 2 * tm * Coutp * 2
    else:
        kind = "none"

    # Explicit VMEM budget (counts double-buffered blocks), capped for v7x.
    vmem_limit = int(min(64 * 1024 * 1024, max(32 * 1024 * 1024, 2 * vmem_est)))

    out = pl.pallas_call(
        _make_fused_kernel(relu, kind),
        out_shape=jax.ShapeDtypeStruct((Mp, Coutp), out_dtype),
        grid=(Mp // tm, Kp // tk),
        in_specs=in_specs,
        out_specs=pl.BlockSpec((tm, Coutp), lambda i, k: (i, 0)),
        scratch_shapes=[pltpu.VMEM((tm, Coutp), jnp.float32)],
        compiler_params=pltpu.CompilerParams(
            dimension_semantics=("parallel", "arbitrary"),
            vmem_limit_bytes=vmem_limit),
    )(*args)
    return out[:M, :Cout]


# ------------------------------ JAX glue ---------------------------------- #
def _im2col_3x3(x_nhwc, stride):
    """(N,H,W,C) -> (N*Ho*Wo, 9*C) patches for a 3x3 conv, padding=1."""
    N, H, W, C = x_nhwc.shape
    xp = jnp.pad(x_nhwc, ((0, 0), (1, 1), (1, 1), (0, 0)))
    Ho = (H - 1) // stride + 1
    Wo = (W - 1) // stride + 1
    cols = []
    for dh in range(3):
        for dw in range(3):
            cols.append(xp[:, dh:dh + (Ho - 1) * stride + 1:stride,
                              dw:dw + (Wo - 1) * stride + 1:stride, :])
    # K ordering: (kh, kw) outer, channel innermost
    patches = jnp.concatenate(cols, axis=-1)
    return patches.reshape(N * Ho * Wo, 9 * C), (N, Ho, Wo)


def _conv3x3_weight(w_oihw):
    """PyTorch (Cout, Cin, 3, 3) -> (9*Cin, Cout) matching the im2col K order."""
    cout, cin = w_oihw.shape[0], w_oihw.shape[1]
    return jnp.transpose(w_oihw, (2, 3, 1, 0)).reshape(9 * cin, cout)


def _fold_bn(bn):
    scale = bn["gamma"] / jnp.sqrt(bn["var"] + _BN_EPS)
    bias = bn["beta"] - bn["mean"] * scale
    return scale, bias


def basic_block_forward(x_nchw, params, *, in_channels, out_channels, stride):
    x = jnp.transpose(x_nchw, (0, 2, 3, 1)).astype(jnp.float32)   # NCHW -> NHWC
    N, H, W, _ = x.shape

    # ---- conv1(3x3, stride) + bn1 + relu : one fused kernel, bf16 out ---- #
    s1, b1 = _fold_bn(params["bn1"])
    w1 = _conv3x3_weight(params["w1"]) * s1[None, :]        # fold BN scale
    p1, (N, Ho, Wo) = _im2col_3x3(x.astype(jnp.bfloat16), stride)
    y1 = fused_conv_matmul(p1, w1, b1, relu=True, out_dtype=jnp.bfloat16)
    y1 = y1.reshape(N, Ho, Wo, out_channels)

    # ---- conv2(3x3) + bn2 + shortcut + relu : one fused kernel ----------- #
    s2, b2 = _fold_bn(params["bn2"])
    w2 = _conv3x3_weight(params["w2"]) * s2[None, :]
    p2, _ = _im2col_3x3(y1, 1)                              # already bf16

    if stride != 1 or in_channels != out_channels:
        # 1x1 projection shortcut fused into the same kernel.
        ssc, bsc = _fold_bn(params["bn_sc"])
        w_sc = params["w_sc"].reshape(out_channels, in_channels).T * ssc[None, :]
        xs = x[:, ::stride, ::stride, :].reshape(N * Ho * Wo, in_channels)
        out = fused_conv_matmul(p2, w2, b2 + bsc, relu=True, xs=xs, ws=w_sc,
                                out_dtype=jnp.float32)
    else:
        res = x.reshape(N * Ho * Wo, in_channels)
        out = fused_conv_matmul(p2, w2, b2, relu=True, residual=res,
                                out_dtype=jnp.float32)

    out = out.reshape(N, Ho, Wo, out_channels)
    return jnp.transpose(out, (0, 3, 1, 2))                 # NHWC -> NCHW


# ------------------------ deterministic parameters ------------------------- #
def init_params(key, cin, cout):
    ks = jax.random.split(key, 6)

    def bn(k, c):
        k1, k2, k3, k4 = jax.random.split(k, 4)
        return dict(
            gamma=(1.0 + 0.1 * jax.random.normal(k1, (c,))).astype(jnp.float32),
            beta=(0.1 * jax.random.normal(k2, (c,))).astype(jnp.float32),
            mean=(0.1 * jax.random.normal(k3, (c,))).astype(jnp.float32),
            var=jax.random.uniform(k4, (c,), minval=0.5, maxval=1.5).astype(jnp.float32),
        )

    return dict(
        w1=(0.1 * jax.random.normal(ks[0], (cout, cin, 3, 3))).astype(jnp.float32),
        bn1=bn(ks[1], cout),
        w2=(0.1 * jax.random.normal(ks[2], (cout, cout, 3, 3))).astype(jnp.float32),
        bn2=bn(ks[3], cout),
        w_sc=(0.1 * jax.random.normal(ks[4], (cout, cin, 1, 1))).astype(jnp.float32),
        bn_sc=bn(ks[5], cout),
    )


# ------------------------------ reference ---------------------------------- #
def _ref_forward(x_nchw, params, *, in_channels, out_channels, stride):
    def conv(x, w, s, pad):
        return jax.lax.conv_general_dilated(
            x, w, (s, s), [(pad, pad), (pad, pad)],
            dimension_numbers=("NCHW", "OIHW", "NCHW"))

    def bn(x, p):
        sc = p["gamma"] / jnp.sqrt(p["var"] + _BN_EPS)
        b = p["beta"] - p["mean"] * sc
        return x * sc[None, :, None, None] + b[None, :, None, None]

    y = jax.nn.relu(bn(conv(x_nchw, params["w1"], stride, 1), params["bn1"]))
    y = bn(conv(y, params["w2"], 1, 1), params["bn2"])
    if stride != 1 or in_channels != out_channels:
        sc = bn(conv(x_nchw, params["w_sc"], stride, 0), params["bn_sc"])
    else:
        sc = x_nchw
    return jax.nn.relu(y + sc)


if __name__ == "__main__":
    key = jax.random.PRNGKey(0)
    kx1, kp1, kx2, kp2 = jax.random.split(key, 4)

    fwd = jax.jit(basic_block_forward,
                  static_argnames=("in_channels", "out_channels", "stride"))

    # Config 1: projection shortcut (stride=2, channel change 4 -> 8).
    N, Cin, H, W = 2, 4, 16, 16
    Cout, stride = 8, 2
    x = jax.random.normal(kx1, (N, Cin, H, W), dtype=jnp.float32)
    params = init_params(kp1, Cin, Cout)
    out = fwd(x, params, in_channels=Cin, out_channels=Cout, stride=stride)
    out = jax.block_until_ready(out)
    assert out.shape == (N, Cout, H // stride, W // stride), out.shape
    ref = _ref_forward(x, params, in_channels=Cin, out_channels=Cout, stride=stride)
    np.testing.assert_allclose(np.asarray(out), np.asarray(ref), rtol=5e-2, atol=5e-2)

    # Config 2: identity shortcut (stride=1, channels 8 -> 8).
    x2 = jax.random.normal(kx2, (N, Cout, H, W), dtype=jnp.float32)
    params2 = init_params(kp2, Cout, Cout)
    out2 = fwd(x2, params2, in_channels=Cout, out_channels=Cout, stride=1)
    out2 = jax.block_until_ready(out2)
    assert out2.shape == (N, Cout, H, W), out2.shape
    ref2 = _ref_forward(x2, params2, in_channels=Cout, out_channels=Cout, stride=1)
    np.testing.assert_allclose(np.asarray(out2), np.asarray(ref2), rtol=5e-2, atol=5e-2)

    print("KERNEL_OK")
</pallas_src>

<mosaic_0001>
module attributes {stable_mosaic.version = 11 : i64} {
  func.func @kernel(%arg0: i32, %arg1: i32, %arg2: memref<128x128xbf16, #tpu.memory_space<vmem>>, %arg3: memref<128x128xbf16, #tpu.memory_space<vmem>>, %arg4: memref<1x128xf32, #tpu.memory_space<vmem>>, %arg5: memref<128x128xbf16, #tpu.memory_space<vmem>>, %arg6: memref<128x128xf32, #tpu.memory_space<vmem>>) attributes {dimension_semantics = [#tpu.dimension_semantics<parallel>, #tpu.dimension_semantics<arbitrary>], iteration_bounds = array<i64: 1, 1>, scalar_prefetch = 0 : i64, scratch_operands = 1 : i64, tpu.core_type = #tpu.core_type<tc>, window_params = [{transform_indices = @transform_0, window_bounds = array<i64: 128, 128>}, {transform_indices = @transform_1, window_bounds = array<i64: 128, 128>}, {pipeline_mode = #tpu.pipeline_mode<synchronous>, transform_indices = @transform_2, window_bounds = array<i64: 1, 128>}, {transform_indices = @transform_3, window_bounds = array<i64: 128, 128>}]} {
    %c0_i32 = arith.constant 0 : i32
    %0 = arith.cmpi eq, %arg1, %c0_i32 : i32
    %1 = arith.extui %0 : i1 to i32
    %c0_i32_0 = arith.constant 0 : i32
    %2 = arith.cmpi ne, %1, %c0_i32_0 : i32
    scf.if %2 {
      %cst_10 = arith.constant 0.000000e+00 : f32
      %12 = vector.broadcast %cst_10 : f32 to vector<128x128xf32>
      %c0_11 = arith.constant 0 : index
      %c0_12 = arith.constant 0 : index
      %13 = vector.load %arg6[%c0_11, %c0_12] : memref<128x128xf32, #tpu.memory_space<vmem>>, vector<128x128xf32>
      tpu.vector_store %arg6[%c0_11, %c0_12], %12 {strides = array<i32>} : memref<128x128xf32, #tpu.memory_space<vmem>>, vector<128x128xf32>,
    } else {
    }
    %c0 = arith.constant 0 : index
    %c0_1 = arith.constant 0 : index
    %3 = vector.load %arg6[%c0, %c0_1] : memref<128x128xf32, #tpu.memory_space<vmem>>, vector<128x128xf32>
    %c0_2 = arith.constant 0 : index
    %c0_3 = arith.constant 0 : index
    %4 = vector.load %arg2[%c0_2, %c0_3] : memref<128x128xbf16, #tpu.memory_space<vmem>>, vector<128x128xbf16>
    %c0_4 = arith.constant 0 : index
    %c0_5 = arith.constant 0 : index
    %5 = vector.load %arg3[%c0_4, %c0_5] : memref<128x128xbf16, #tpu.memory_space<vmem>>, vector<128x128xbf16>
    %cst = arith.constant dense<0.000000e+00> : vector<128x128xf32>
    %6 = tpu.matmul %4, %5, %cst {dimension_numbers = #tpu.dot_dimension_numbers<[1], [0], [0], [1], [0, 0, 1, 1], [], []>} : vector<128x128xbf16>, vector<128x128xbf16>, vector<128x128xf32> -> vector<128x128xf32>
    %7 = arith.addf %3, %6 : vector<128x128xf32>
    %c0_6 = arith.constant 0 : index
    %c0_7 = arith.constant 0 : index
    %8 = vector.load %arg6[%c0_6, %c0_7] : memref<128x128xf32, #tpu.memory_space<vmem>>, vector<128x128xf32>
    tpu.vector_store %arg6[%c0_6, %c0_7], %7 {strides = array<i32>} : memref<128x128xf32, #tpu.memory_space<vmem>>, vector<128x128xf32>,
    %c0_i32_8 = arith.constant 0 : i32
    %9 = arith.cmpi eq, %arg1, %c0_i32_8 : i32
    %10 = arith.extui %9 : i1 to i32
    %c0_i32_9 = arith.constant 0 : i32
    %11 = arith.cmpi ne, %10, %c0_i32_9 : i32
    scf.if %11 {
      %c0_10 = arith.constant 0 : index
      %c0_11 = arith.constant 0 : index
      %12 = vector.load %arg6[%c0_10, %c0_11] : memref<128x128xf32, #tpu.memory_space<vmem>>, vector<128x128xf32>
      %c0_12 = arith.constant 0 : index
      %c0_13 = arith.constant 0 : index
      %13 = vector.load %arg4[%c0_12, %c0_13] : memref<1x128xf32, #tpu.memory_space<vmem>>, vector<1x128xf32>
      %14 = vector.broadcast %13 : vector<1x128xf32> to vector<128x128xf32>
      %15 = arith.addf %12, %14 : vector<128x128xf32>
      %cst_14 = arith.constant 0.000000e+00 : f32
      %16 = vector.broadcast %cst_14 : f32 to vector<128x128xf32>
      %17 = arith.maximumf %15, %16 : vector<128x128xf32>
      %18 = arith.truncf %17 : vector<128x128xf32> to vector<128x128xbf16>
      %c0_15 = arith.constant 0 : index
      %c0_16 = arith.constant 0 : index
      %19 = vector.load %arg5[%c0_15, %c0_16] : memref<128x128xbf16, #tpu.memory_space<vmem>>, vector<128x128xbf16>
      tpu.vector_store %arg5[%c0_15, %c0_16], %18 {strides = array<i32>} : memref<128x128xbf16, #tpu.memory_space<vmem>>, vector<128x128xbf16>,
    } else {
    }
    return
  }
  func.func @transform_0(%arg0: i32, %arg1: i32) -> (i32, i32) {
    %c0_i32 = arith.constant 0 : i32
    return %arg0, %arg1 : i32, i32
  }
  func.func @transform_1(%arg0: i32, %arg1: i32) -> (i32, i32) {
    %c0_i32 = arith.constant 0 : i32
    %c0_i32_0 = arith.constant 0 : i32
    return %arg1, %c0_i32 : i32, i32
  }
  func.func @transform_2(%arg0: i32, %arg1: i32) -> (i32, i32) {
    %c0_i32 = arith.constant 0 : i32
    %c0_i32_0 = arith.constant 0 : i32
    %c0_i32_1 = arith.constant 0 : i32
    return %c0_i32, %c0_i32_0 : i32, i32
  }
  func.func @transform_3(%arg0: i32, %arg1: i32) -> (i32, i32) {
    %c0_i32 = arith.constant 0 : i32
    %c0_i32_0 = arith.constant 0 : i32
    return %arg0, %c0_i32 : i32, i32
  }
}

module attributes {stable_mosaic.version = 11 : i64} {
  func.func @kernel(%arg0: i32, %arg1: i32, %arg2: memref<128x128xbf16, #tpu.memory_space<vmem>>, %arg3: memref<128x128xbf16, #tpu.memory_space<vmem>>, %arg4: memref<1x128xf32, #tpu.memory_space<vmem>>, %arg5: memref<128x128xbf16, #tpu.memory_space<vmem>>, %arg6: memref<128x128xbf16, #tpu.memory_space<vmem>>, %arg7: memref<128x128xf32, #tpu.memory_space<vmem>>, %arg8: memref<128x128xf32, #tpu.memory_space<vmem>>) attributes {dimension_semantics = [#tpu.dimension_semantics<parallel>, #tpu.dimension_semantics<arbitrary>], iteration_bounds = array<i64: 1, 1>, scalar_prefetch = 0 : i64, scratch_operands = 1 : i64, tpu.core_type = #tpu.core_type<tc>, window_params = [{transform_indices = @transform_0, window_bounds = array<i64: 128, 128>}, {transform_indices = @transform_1, window_bounds = array<i64: 128, 128>}, {pipeline_mode = #tpu.pipeline_mode<synchronous>, transform_indices = @transform_2, window_bounds = array<i64: 1, 128>}, {transform_indices = @transform_3, window_bounds = array<i64: 128, 128>}, {pipeline_mode = #tpu.pipeline_mode<synchronous>, transform_indices = @transform_4, window_bounds = array<i64: 128, 128>}, {transform_indices = @transform_5, window_bounds = array<i64: 128, 128>}]} {
    %c0_i32 = arith.constant 0 : i32
    %0 = arith.cmpi eq, %arg1, %c0_i32 : i32
    %1 = arith.extui %0 : i1 to i32
    %c0_i32_0 = arith.constant 0 : i32
    %2 = arith.cmpi ne, %1, %c0_i32_0 : i32
    scf.if %2 {
      %c0_10 = arith.constant 0 : index
      %c0_11 = arith.constant 0 : index
      %12 = vector.load %arg5[%c0_10, %c0_11] : memref<128x128xbf16, #tpu.memory_space<vmem>>, vector<128x128xbf16>
      %c0_12 = arith.constant 0 : index
      %c0_13 = arith.constant 0 : index
      %13 = vector.load %arg6[%c0_12, %c0_13] : memref<128x128xbf16, #tpu.memory_space<vmem>>, vector<128x128xbf16>
      %cst_14 = arith.constant dense<0.000000e+00> : vector<128x128xf32>
      %14 = tpu.matmul %12, %13, %cst_14 {dimension_numbers = #tpu.dot_dimension_numbers<[1], [0], [0], [1], [0, 0, 1, 1], [], []>} : vector<128x128xbf16>, vector<128x128xbf16>, vector<128x128xf32> -> vector<128x128xf32>
      %c0_15 = arith.constant 0 : index
      %c0_16 = arith.constant 0 : index
      %15 = vector.load %arg8[%c0_15, %c0_16] : memref<128x128xf32, #tpu.memory_space<vmem>>, vector<128x128xf32>
      tpu.vector_store %arg8[%c0_15, %c0_16], %14 {strides = array<i32>} : memref<128x128xf32, #tpu.memory_space<vmem>>, vector<128x128xf32>,
    } else {
    }
    %c0 = arith.constant 0 : index
    %c0_1 = arith.constant 0 : index
    %3 = vector.load %arg8[%c0, %c0_1] : memref<128x128xf32, #tpu.memory_space<vmem>>, vector<128x128xf32>
    %c0_2 = arith.constant 0 : index
    %c0_3 = arith.constant 0 : index
    %4 = vector.load %arg2[%c0_2, %c0_3] : memref<128x128xbf16, #tpu.memory_space<vmem>>, vector<128x128xbf16>
    %c0_4 = arith.constant 0 : index
    %c0_5 = arith.constant 0 : index
    %5 = vector.load %arg3[%c0_4, %c0_5] : memref<128x128xbf16, #tpu.memory_space<vmem>>, vector<128x128xbf16>
    %cst = arith.constant dense<0.000000e+00> : vector<128x128xf32>
    %6 = tpu.matmul %4, %5, %cst {dimension_numbers = #tpu.dot_dimension_numbers<[1], [0], [0], [1], [0, 0, 1, 1], [], []>} : vector<128x128xbf16>, vector<128x128xbf16>, vector<128x128xf32> -> vector<128x128xf32>
    %7 = arith.addf %3, %6 : vector<128x128xf32>
    %c0_6 = arith.constant 0 : index
    %c0_7 = arith.constant 0 : index
    %8 = vector.load %arg8[%c0_6, %c0_7] : memref<128x128xf32, #tpu.memory_space<vmem>>, vector<128x128xf32>
    tpu.vector_store %arg8[%c0_6, %c0_7], %7 {strides = array<i32>} : memref<128x128xf32, #tpu.memory_space<vmem>>, vector<128x128xf32>,
    %c0_i32_8 = arith.constant 0 : i32
    %9 = arith.cmpi eq, %arg1, %c0_i32_8 : i32
    %10 = arith.extui %9 : i1 to i32
    %c0_i32_9 = arith.constant 0 : i32
    %11 = arith.cmpi ne, %10, %c0_i32_9 : i32
    scf.if %11 {
      %c0_10 = arith.constant 0 : index
      %c0_11 = arith.constant 0 : index
      %12 = vector.load %arg8[%c0_10, %c0_11] : memref<128x128xf32, #tpu.memory_space<vmem>>, vector<128x128xf32>
      %c0_12 = arith.constant 0 : index
      %c0_13 = arith.constant 0 : index
      %13 = vector.load %arg4[%c0_12, %c0_13] : memref<1x128xf32, #tpu.memory_space<vmem>>, vector<1x128xf32>
      %14 = vector.broadcast %13 : vector<1x128xf32> to vector<128x128xf32>
      %15 = arith.addf %12, %14 : vector<128x128xf32>
      %cst_14 = arith.constant 0.000000e+00 : f32
      %16 = vector.broadcast %cst_14 : f32 to vector<128x128xf32>
      %17 = arith.maximumf %15, %16 : vector<128x128xf32>
      %c0_15 = arith.constant 0 : index
      %c0_16 = arith.constant 0 : index
      %18 = vector.load %arg7[%c0_15, %c0_16] : memref<128x128xf32, #tpu.memory_space<vmem>>, vector<128x128xf32>
      tpu.vector_store %arg7[%c0_15, %c0_16], %17 {strides = array<i32>} : memref<128x128xf32, #tpu.memory_space<vmem>>, vector<128x128xf32>,
    } else {
    }
    return
  }
  func.func @transform_0(%arg0: i32, %arg1: i32) -> (i32, i32) {
    %c0_i32 = arith.constant 0 : i32
    return %arg0, %arg1 : i32, i32
  }
  func.func @transform_1(%arg0: i32, %arg1: i32) -> (i32, i32) {
    %c0_i32 = arith.constant 0 : i32
    %c0_i32_0 = arith.constant 0 : i32
    return %arg1, %c0_i32 : i32, i32
  }
  func.func @transform_2(%arg0: i32, %arg1: i32) -> (i32, i32) {
    %c0_i32 = arith.constant 0 : i32
    %c0_i32_0 = arith.constant 0 : i32
    %c0_i32_1 = arith.constant 0 : i32
    return %c0_i32, %c0_i32_0 : i32, i32
  }
  func.func @transform_3(%arg0: i32, %arg1: i32) -> (i32, i32) {
    %c0_i32 = arith.constant 0 : i32
    %c0_i32_0 = arith.constant 0 : i32
    return %arg0, %c0_i32 : i32, i32
  }
  func.func @transform_4(%arg0: i32, %arg1: i32) -> (i32, i32) {
    %c0_i32 = arith.constant 0 : i32
    %c0_i32_0 = arith.constant 0 : i32
    %c0_i32_1 = arith.constant 0 : i32
    return %c0_i32, %c0_i32_0 : i32, i32
  }
  func.func @transform_5(%arg0: i32, %arg1: i32) -> (i32, i32) {
    %c0_i32 = arith.constant 0 : i32
    %c0_i32_0 = arith.constant 0 : i32
    return %arg0, %c0_i32 : i32, i32
  }
}

</mosaic_0001>

<bundles_post_ra>
// kernel: basic_block_forward.2
= control target key start
LH: loop header
LB: loop body
LE: loop exit
PB: predicated region body
PF: predicated region fallthrough
CT: control target
= control target key end

     0   :  { %s721_s1 = inlined_call_operand.vmem [shape: bf16[128,128], index: 1, kind: input, shape index: {}]   ;;  %s722_s0 = inlined_call_operand.vmem [shape: bf16[128,128], index: 0, kind: input, shape index: {}]   ;;  %s723_s2 = inlined_call_operand.vmem [shape: f32[1,128], index: 2, kind: input, shape index: {}]   ;;  %s724_s3 = inlined_call_operand.vmem [shape: bf16[128,128], index: 3, kind: output, shape index: {}]  }
   0x1   :  { %v610_v0 = vld [vmem:[%s721_s1] sm:$0xff]   ;;  %v611_v1 = vld [vmem:[%s721_s1 + $0x8] sm:$0xff]   ;;  %v612_v2 = vld [vmem:[%s721_s1 + $0x10] sm:$0xff]  }
   0x2   :  { %562 = vmatprep.subr.bf16.mxu0 %v610_v0  ;;  %594 = vmatprep.subr.bf16.mxu1 %v610_v0  ;;  %v613_v3 = vld [vmem:[%s721_s1 + $0x18] sm:$0xff]   ;;  %v618_v4 = vld [vmem:[%s722_s0] sm:$0xff]   ;;  %v615_v7 = vld [vmem:[%s721_s1 + $0x28] sm:$0xff]  }
   0x3   :  { %563 = vmatpush3.bf16.msra.mxu0 %v610_v0  ;;  %602 = vmatpush3.bf16.msra.mxu1 %v610_v0  ;;  %v619_v5 = vld [vmem:[%s722_s0 + $0x20] sm:$0xff]   ;;  %v616_v8 = vld [vmem:[%s721_s1 + $0x30] sm:$0xff]   ;;  %v617_v9 = vld [vmem:[%s721_s1 + $0x38] sm:$0xff]  }
   0x4   :  { %564 = vmatprep.subr.bf16.mxu0 %v611_v1  ;;  %595 = vmatprep.subr.bf16.mxu1 %v611_v1  ;;  %v614_v6 = vld [vmem:[%s721_s1 + $0x20] sm:$0xff]   ;;  %v620_v10 = vld [vmem:[%s722_s0 + $0x8] sm:$0xff]   ;;  %v622_v12 = vld [vmem:[%s722_s0 + $0x10] sm:$0xff]  }
   0x5   :  { %578 = vmatprep.mubr.bf16.mxu0 %v618_v4  ;;  %586 = vmatprep.mubr.bf16.mxu1 %v619_v5  ;;  %v621_v11 = vld [vmem:[%s722_s0 + $0x28] sm:$0xff]   ;;  %v623_v13 = vld [vmem:[%s722_s0 + $0x30] sm:$0xff]   ;;  %v624_v14 = vld [vmem:[%s722_s0 + $0x18] sm:$0xff]  }
   0x6   :  { %v625_v15 = vld [vmem:[%s722_s0 + $0x38] sm:$0xff]   ;;  %v466_v16 = vld [vmem:[%s723_s2] ss:$0 sm:$0xff] }
   0x7   :  { %565 = vmatpush3.bf16.msra.mxu0 %v611_v1  ;;  %603 = vmatpush3.bf16.msra.mxu1 %v611_v1 }
   0x8   :  { %566 = vmatprep.subr.bf16.mxu0 %v612_v2  ;;  %596 = vmatprep.subr.bf16.mxu1 %v612_v2 }
   0xb   :  { %567 = vmatpush3.bf16.msra.mxu0 %v612_v2  ;;  %604 = vmatpush3.bf16.msra.mxu1 %v612_v2 }
   0xc   :  { %568 = vmatprep.subr.bf16.mxu0 %v613_v3  ;;  %597 = vmatprep.subr.bf16.mxu1 %v613_v3 }
   0xf   :  { %569 = vmatpush3.bf16.msra.mxu0 %v613_v3  ;;  %605 = vmatpush3.bf16.msra.mxu1 %v613_v3 }
  0x10   :  { %570 = vmatprep.subr.bf16.mxu0 %v614_v6  ;;  %598 = vmatprep.subr.bf16.mxu1 %v614_v6 }
  0x13   :  { %571 = vmatpush3.bf16.msra.mxu0 %v614_v6  ;;  %606 = vmatpush3.bf16.msra.mxu1 %v614_v6 }
  0x14   :  { %572 = vmatprep.subr.bf16.mxu0 %v615_v7  ;;  %599 = vmatprep.subr.bf16.mxu1 %v615_v7 }
  0x17   :  { %573 = vmatpush3.bf16.msra.mxu0 %v615_v7  ;;  %607 = vmatpush3.bf16.msra.mxu1 %v615_v7 }
  0x18   :  { %574 = vmatprep.subr.bf16.mxu0 %v616_v8  ;;  %600 = vmatprep.subr.bf16.mxu1 %v616_v8 }
  0x1b   :  { %575 = vmatpush3.bf16.msra.mxu0 %v616_v8  ;;  %608 = vmatpush3.bf16.msra.mxu1 %v616_v8 }
  0x1c   :  { %576 = vmatprep.subr.bf16.mxu0 %v617_v9  ;;  %601 = vmatprep.subr.bf16.mxu1 %v617_v9 }
  0x1f   :  { %577 = vmatpush3.bf16.msra.mxu0 %v617_v9  ;;  %609 = vmatpush3.bf16.msra.mxu1 %v617_v9 }
  0x22   :  { %579 = vmatmul.mubr.bf16.vlgmr.msra.gmra.mrb[0].mxu0 %v620_v10  ;;  %587 = vmatmul.mubr.bf16.vlgmr.msra.gmra.mrb[0].mxu1 %v621_v11 }
  0x23   :  { %582 = vmatprep.mubr.bf16.mxu0 %v622_v12  ;;  %590 = vmatprep.mubr.bf16.mxu1 %v623_v13 }
  0x2a   :  { %583 = vmatmul.mubr.bf16.gmra.mrb[4].mxu0 %v624_v14  ;;  %591 = vmatmul.mubr.bf16.gmra.mrb[4].mxu1 %v625_v15 }
  0xf5   :  { %v580_v17 = vpop.f32.mrb[0].mxu0  ;;  %v588_v18 = vpop.f32.mrb[0].mxu1 }
  0xf6   :  { %v336_v19 = vadd.f32 %v580_v17, %v466_v16  ;;  %v344_v20 = vadd.f32 %v588_v18, %v466_v16  ;;  %v213_v21 = vpop.f32.mrb[1].mxu0  ;;  %v245_v22 = vpop.f32.mrb[1].mxu1 }
  0xf7   :  { %v334_v23 = vadd.f32 %v466_v16, %v213_v21  ;;  %v342_v24 = vadd.f32 %v466_v16, %v245_v22  ;;  %v581_v25 = vpop.f32.mrb[2].mxu0  ;;  %v589_v26 = vpop.f32.mrb[2].mxu1 }
  0xf8   :  { %v337_v27 = vadd.f32 %v581_v25, %v466_v16  ;;  %v345_v28 = vadd.f32 %v589_v26, %v466_v16  ;;  %v216_v29 = vpop.f32.mrb[3].mxu0  ;;  %v248_v30 = vpop.f32.mrb[3].mxu1  ;;  %v352_v33 = vmax.f32 %v336_v19, 0.0  ;;  %v360_v34 = vmax.f32 %v344_v20, 0.0 }
  0xf9   :  { %v335_v31 = vadd.f32 %v466_v16, %v216_v29  ;;  %v343_v32 = vadd.f32 %v466_v16, %v248_v30  ;;  %v350_v37 = vmax.f32 %v334_v23, 0.0  ;;  %v358_v38 = vmax.f32 %v342_v24, 0.0 }
  0xfa   :  { %v353_v35 = vmax.f32 %v337_v27, 0.0  ;;  %v361_v36 = vmax.f32 %v345_v28, 0.0 }
  0xfb   :  { %v351_v39 = vmax.f32 %v335_v31, 0.0  ;;  %v359_v40 = vmax.f32 %v343_v32, 0.0 }
  0xfc   :  { %v507_v41 = vpack.c.bf16 %v353_v35, %v352_v33  ;;  %v527_v42 = vpack.c.bf16 %v361_v36, %v360_v34 }
  0xfd   :  { %v502_v43 = vpack.c.bf16 %v351_v39, %v350_v37  ;;  %v522_v44 = vpack.c.bf16 %v359_v40, %v358_v38  ;;  %v584_v45 = vpop.f32.mrb[4].mxu0  ;;  %v592_v46 = vpop.f32.mrb[4].mxu1 }
  0xfe   :  { %539 = vst [vmem:[%s724_s3 + $0x8] sm:$0xff] %v507_v41   ;;  %543 = vst [vmem:[%s724_s3 + $0x28] sm:$0xff] %v527_v42   ;;  %v340_v47 = vadd.f32 %v584_v45, %v466_v16  ;;  %v348_v48 = vadd.f32 %v592_v46, %v466_v16  ;;  %v229_v49 = vpop.f32.mrb[5].mxu0  ;;  %v261_v50 = vpop.f32.mrb[5].mxu1 }
  0xff   :  { %503 = vst [vmem:[%s724_s3] sm:$0xff] %v502_v43   ;;  %542 = vst [vmem:[%s724_s3 + $0x20] sm:$0xff] %v522_v44   ;;  %v338_v51 = vadd.f32 %v466_v16, %v229_v49  ;;  %v346_v52 = vadd.f32 %v466_v16, %v261_v50  ;;  %v585_v53 = vpop.f32.mrb[6].mxu0  ;;  %v593_v54 = vpop.f32.mrb[6].mxu1 }
 0x100   :  { %v341_v55 = vadd.f32 %v585_v53, %v466_v16  ;;  %v349_v56 = vadd.f32 %v593_v54, %v466_v16  ;;  %v232_v57 = vpop.f32.mrb[7].mxu0  ;;  %v264_v58 = vpop.f32.mrb[7].mxu1  ;;  %v356_v61 = vmax.f32 %v340_v47, 0.0  ;;  %v364_v62 = vmax.f32 %v348_v48, 0.0 }
 0x101   :  { %v339_v59 = vadd.f32 %v466_v16, %v232_v57  ;;  %v347_v60 = vadd.f32 %v466_v16, %v264_v58  ;;  %v354_v1 = vmax.f32 %v338_v51, 0.0  ;;  %v362_v2 = vmax.f32 %v346_v52, 0.0 }
 0x102   :  { %v357_v63 = vmax.f32 %v341_v55, 0.0  ;;  %v365_v0 = vmax.f32 %v349_v56, 0.0 }
 0x103   :  { %v355_v3 = vmax.f32 %v339_v59, 0.0  ;;  %v363_v4 = vmax.f32 %v347_v60, 0.0 }
 0x104   :  { %v517_v5 = vpack.c.bf16 %v357_v63, %v356_v61  ;;  %v537_v6 = vpack.c.bf16 %v365_v0, %v364_v62 }
 0x105   :  { %v512_v7 = vpack.c.bf16 %v355_v3, %v354_v1  ;;  %v532_v8 = vpack.c.bf16 %v363_v4, %v362_v2 }
 0x106   :  { %541 = vst [vmem:[%s724_s3 + $0x18] sm:$0xff] %v517_v5   ;;  %545 = vst [vmem:[%s724_s3 + $0x38] sm:$0xff] %v537_v6  }
 0x107   :  { %540 = vst [vmem:[%s724_s3 + $0x10] sm:$0xff] %v512_v7   ;;  %544 = vst [vmem:[%s724_s3 + $0x30] sm:$0xff] %v532_v8  }

// kernel: basic_block_forward.3
= control target key start
LH: loop header
LB: loop body
LE: loop exit
PB: predicated region body
PF: predicated region fallthrough
CT: control target
= control target key end

     0   :  { %s989_s4 = inlined_call_operand.vmem [shape: bf16[128,128], index: 4, kind: input, shape index: {}]   ;;  %s990_s1 = inlined_call_operand.vmem [shape: bf16[128,128], index: 1, kind: input, shape index: {}]   ;;  %s991_s3 = inlined_call_operand.vmem [shape: bf16[128,128], index: 3, kind: input, shape index: {}]   ;;  %s992_s0 = inlined_call_operand.vmem [shape: bf16[128,128], index: 0, kind: input, shape index: {}]   ;;  %s993_s2 = inlined_call_operand.vmem [shape: f32[1,128], index: 2, kind: input, shape index: {}]   ;;  %s994_s5 = inlined_call_operand.vmem [shape: f32[128,128], index: 5, kind: output, shape index: {}]  }
   0x1   :  { %v762_v0 = vld [vmem:[%s989_s4] sm:$0xff]   ;;  %v764_v2 = vld [vmem:[%s989_s4 + $0x8] sm:$0xff]   ;;  %v766_v4 = vld [vmem:[%s989_s4 + $0x10] sm:$0xff]  }
   0x2   :  { %v763_v1 = vld [vmem:[%s990_s1] sm:$0xff]   ;;  %682 = vmatprep.subr.bf16.mxu1 %v762_v0  ;;  %v765_v3 = vld [vmem:[%s990_s1 + $0x8] sm:$0xff]   ;;  %v767_v5 = vld [vmem:[%s990_s1 + $0x10] sm:$0xff]  }
   0x3   :  { %714 = vmatprep.subr.bf16.mxu0 %v763_v1  ;;  %683 = vmatpush3.bf16.msra.mxu1 %v762_v0  ;;  %v768_v6 = vld [vmem:[%s989_s4 + $0x18] sm:$0xff]   ;;  %v770_v8 = vld [vmem:[%s989_s4 + $0x20] sm:$0xff]   ;;  %v772_v10 = vld [vmem:[%s989_s4 + $0x28] sm:$0xff]  }
   0x4   :  { %715 = vmatpush3.bf16.msra.mxu0 %v763_v1  ;;  %684 = vmatprep.subr.bf16.mxu1 %v764_v2  ;;  %v769_v7 = vld [vmem:[%s990_s1 + $0x18] sm:$0xff]   ;;  %v771_v9 = vld [vmem:[%s990_s1 + $0x20] sm:$0xff]   ;;  %v773_v11 = vld [vmem:[%s990_s1 + $0x28] sm:$0xff]  }
   0x5   :  { %716 = vmatprep.subr.bf16.mxu0 %v765_v3  ;;  %v778_v12 = vld [vmem:[%s991_s3] sm:$0xff]   ;;  %v774_v14 = vld [vmem:[%s989_s4 + $0x30] sm:$0xff]   ;;  %v776_v16 = vld [vmem:[%s989_s4 + $0x38] sm:$0xff]  }
   0x6   :  { %v779_v13 = vld [vmem:[%s992_s0] sm:$0xff]   ;;  %698 = vmatprep.mubr.bf16.mxu1 %v778_v12  ;;  %v775_v15 = vld [vmem:[%s990_s1 + $0x30] sm:$0xff]   ;;  %v777_v17 = vld [vmem:[%s990_s1 + $0x38] sm:$0xff]  }
   0x7   :  { %685 = vmatpush3.bf16.msra.mxu1 %v764_v2  ;;  %730 = vmatprep.mubr.bf16.mxu0 %v779_v13  ;;  %v780_v18 = vld [vmem:[%s991_s3 + $0x8] sm:$0xff]   ;;  %v782_v20 = vld [vmem:[%s991_s3 + $0x10] sm:$0xff]   ;;  %v784_v22 = vld [vmem:[%s991_s3 + $0x18] sm:$0xff]  }
   0x8   :  { %717 = vmatpush3.bf16.msra.mxu0 %v765_v3  ;;  %686 = vmatprep.subr.bf16.mxu1 %v766_v4  ;;  %v781_v19 = vld [vmem:[%s992_s0 + $0x8] sm:$0xff]   ;;  %v783_v21 = vld [vmem:[%s992_s0 + $0x10] sm:$0xff]   ;;  %v785_v23 = vld [vmem:[%s992_s0 + $0x18] sm:$0xff]  }
   0x9   :  { %718 = vmatprep.subr.bf16.mxu0 %v767_v5  ;;  %v786_v24 = vld [vmem:[%s991_s3 + $0x20] sm:$0xff]   ;;  %v788_v26 = vld [vmem:[%s991_s3 + $0x28] sm:$0xff]   ;;  %v790_v28 = vld [vmem:[%s991_s3 + $0x30] sm:$0xff]  }
   0xa   :  { %v787_v25 = vld [vmem:[%s992_s0 + $0x20] sm:$0xff]   ;;  %v789_v27 = vld [vmem:[%s992_s0 + $0x28] sm:$0xff]   ;;  %v791_v29 = vld [vmem:[%s992_s0 + $0x30] sm:$0xff]  }
   0xb   :  { %687 = vmatpush3.bf16.msra.mxu1 %v766_v4  ;;  %v792_v30 = vld [vmem:[%s991_s3 + $0x38] sm:$0xff]   ;;  %v923_v34 = vld [vmem:[%s993_s2] ss:$0 sm:$0xff] }
   0xc   :  { %719 = vmatpush3.bf16.msra.mxu0 %v767_v5  ;;  %688 = vmatprep.subr.bf16.mxu1 %v768_v6  ;;  %v793_v31 = vld [vmem:[%s992_s0 + $0x38] sm:$0xff]  }
   0xd   :  { %720 = vmatprep.subr.bf16.mxu0 %v769_v7 }
   0xf   :  { %689 = vmatpush3.bf16.msra.mxu1 %v768_v6 }
  0x10   :  { %721 = vmatpush3.bf16.msra.mxu0 %v769_v7  ;;  %690 = vmatprep.subr.bf16.mxu1 %v770_v8 }
  0x11   :  { %722 = vmatprep.subr.bf16.mxu0 %v771_v9 }
  0x13   :  { %691 = vmatpush3.bf16.msra.mxu1 %v770_v8 }
  0x14   :  { %723 = vmatpush3.bf16.msra.mxu0 %v771_v9  ;;  %692 = vmatprep.subr.bf16.mxu1 %v772_v10 }
  0x15   :  { %724 = vmatprep.subr.bf16.mxu0 %v773_v11 }
  0x17   :  { %693 = vmatpush3.bf16.msra.mxu1 %v772_v10 }
  0x18   :  { %725 = vmatpush3.bf16.msra.mxu0 %v773_v11  ;;  %694 = vmatprep.subr.bf16.mxu1 %v774_v14 }
  0x19   :  { %726 = vmatprep.subr.bf16.mxu0 %v775_v15 }
  0x1b   :  { %695 = vmatpush3.bf16.msra.mxu1 %v774_v14 }
  0x1c   :  { %727 = vmatpush3.bf16.msra.mxu0 %v775_v15  ;;  %696 = vmatprep.subr.bf16.mxu1 %v776_v16 }
  0x1d   :  { %728 = vmatprep.subr.bf16.mxu0 %v777_v17 }
  0x1f   :  { %697 = vmatpush3.bf16.msra.mxu1 %v776_v16 }
  0x20   :  { %729 = vmatpush3.bf16.msra.mxu0 %v777_v17 }
  0x22   :  { %699 = vmatmul.mubr.bf16.vlgmr.msra.gmra.mrb[0].mxu1 %v780_v18 }
  0x23   :  { %731 = vmatmul.mubr.bf16.vlgmr.msra.gmra.mrb[0].mxu0 %v781_v19  ;;  %702 = vmatprep.mubr.bf16.mxu1 %v782_v20 }
  0x24   :  { %734 = vmatprep.mubr.bf16.mxu0 %v783_v21 }
  0x2a   :  { %703 = vmatmul.mubr.bf16.gmra.mrb[4].mxu1 %v784_v22 }
  0x2b   :  { %735 = vmatmul.mubr.bf16.gmra.mrb[4].mxu0 %v785_v23  ;;  %706 = vmatprep.mubr.bf16.mxu1 %v786_v24 }
  0x2c   :  { %738 = vmatprep.mubr.bf16.mxu0 %v787_v25 }
  0x32   :  { %707 = vmatmul.mubr.bf16.gmra.mrb[8].mxu1 %v788_v26 }
  0x33   :  { %739 = vmatmul.mubr.bf16.gmra.mrb[8].mxu0 %v789_v27  ;;  %710 = vmatprep.mubr.bf16.mxu1 %v790_v28 }
  0x34   :  { %742 = vmatprep.mubr.bf16.mxu0 %v791_v29 }
  0x3a   :  { %711 = vmatmul.mubr.bf16.gmra.mrb[12].mxu1 %v792_v30 }
  0x3b   :  { %743 = vmatmul.mubr.bf16.gmra.mrb[12].mxu0 %v793_v31 }
  0xf5   :  { %v700_v32 = vpop.f32.mrb[0].mxu1 }
  0xf6   :  { %v732_v33 = vpop.f32.mrb[0].mxu0  ;;  %v187_v35 = vpop.f32.mrb[1].mxu1 }
  0xf7   :  { %v509_v36 = vadd.f32 %v732_v33, %v700_v32  ;;  %v444_v37 = vpop.f32.mrb[1].mxu0  ;;  %v701_v38 = vpop.f32.mrb[2].mxu1 }
  0xf8   :  { %v507_v39 = vadd.f32 %v444_v37, %v187_v35  ;;  %v733_v40 = vpop.f32.mrb[2].mxu0  ;;  %v190_v41 = vpop.f32.mrb[3].mxu1 }
  0xf9   :  { %v567_v42 = vadd.f32 %v923_v34, %v509_v36  ;;  %v510_v43 = vadd.f32 %v733_v40, %v701_v38  ;;  %v447_v44 = vpop.f32.mrb[3].mxu0 }
  0xfa   :  { %v565_v45 = vadd.f32 %v923_v34, %v507_v39  ;;  %v508_v46 = vadd.f32 %v447_v44, %v190_v41 }
  0xfb   :  { %v583_v47 = vmax.f32 %v567_v42, 0.0  ;;  %v568_v48 = vadd.f32 %v923_v34, %v510_v43 }
  0xfc   :  { %v581_v49 = vmax.f32 %v565_v45, 0.0  ;;  %v566_v50 = vadd.f32 %v923_v34, %v508_v46 }
  0xfd   :  { %599 = vst [vmem:[%s994_s5 + $0x10] sm:$0xff] %v583_v47  ;;  %v584_v51 = vmax.f32 %v568_v48, 0.0  ;;  %v704_v52 = vpop.f32.mrb[4].mxu1 }
  0xfe   :  { %597 = vst [vmem:[%s994_s5] sm:$0xff] %v581_v49  ;;  %v582_v53 = vmax.f32 %v566_v50, 0.0  ;;  %v736_v54 = vpop.f32.mrb[4].mxu0  ;;  %v203_v55 = vpop.f32.mrb[5].mxu1 }
  0xff   :  { %600 = vst [vmem:[%s994_s5 + $0x18] sm:$0xff] %v584_v51  ;;  %v513_v56 = vadd.f32 %v736_v54, %v704_v52  ;;  %v460_v57 = vpop.f32.mrb[5].mxu0  ;;  %v705_v58 = vpop.f32.mrb[6].mxu1 }
 0x100   :  { %598 = vst [vmem:[%s994_s5 + $0x8] sm:$0xff] %v582_v53  ;;  %v511_v59 = vadd.f32 %v460_v57, %v203_v55  ;;  %v737_v60 = vpop.f32.mrb[6].mxu0  ;;  %v206_v61 = vpop.f32.mrb[7].mxu1 }
 0x101   :  { %v571_v62 = vadd.f32 %v923_v34, %v513_v56  ;;  %v514_v63 = vadd.f32 %v737_v60, %v705_v58  ;;  %v463_v0 = vpop.f32.mrb[7].mxu0 }
 0x102   :  { %v569_v1 = vadd.f32 %v923_v34, %v511_v59  ;;  %v512_v2 = vadd.f32 %v463_v0, %v206_v61 }
 0x103   :  { %v587_v3 = vmax.f32 %v571_v62, 0.0  ;;  %v572_v4 = vadd.f32 %v923_v34, %v514_v63 }
 0x104   :  { %v585_v5 = vmax.f32 %v569_v1, 0.0  ;;  %v570_v6 = vadd.f32 %v923_v34, %v512_v2 }
 0x105   :  { %603 = vst [vmem:[%s994_s5 + $0x30] sm:$0xff] %v587_v3  ;;  %v588_v7 = vmax.f32 %v572_v4, 0.0  ;;  %v708_v8 = vpop.f32.mrb[8].mxu1 }
 0x106   :  { %601 = vst [vmem:[%s994_s5 + $0x20] sm:$0xff] %v585_v5  ;;  %v586_v9 = vmax.f32 %v570_v6, 0.0  ;;  %v740_v10 = vpop.f32.mrb[8].mxu0  ;;  %v219_v11 = vpop.f32.mrb[9].mxu1 }
 0x107   :  { %604 = vst [vmem:[%s994_s5 + $0x38] sm:$0xff] %v588_v7  ;;  %v517_v12 = vadd.f32 %v740_v10, %v708_v8  ;;  %v476_v13 = vpop.f32.mrb[9].mxu0  ;;  %v709_v14 = vpop.f32.mrb[10].mxu1 }
 0x108   :  { %602 = vst [vmem:[%s994_s5 + $0x28] sm:$0xff] %v586_v9  ;;  %v515_v15 = vadd.f32 %v476_v13, %v219_v11  ;;  %v741_v16 = vpop.f32.mrb[10].mxu0  ;;  %v222_v17 = vpop.f32.mrb[11].mxu1 }
 0x109   :  { %v575_v18 = vadd.f32 %v923_v34, %v517_v12  ;;  %v518_v19 = vadd.f32 %v741_v16, %v709_v14  ;;  %v479_v20 = vpop.f32.mrb[11].mxu0 }
 0x10a   :  { %v573_v21 = vadd.f32 %v923_v34, %v515_v15  ;;  %v516_v22 = vadd.f32 %v479_v20, %v222_v17 }
 0x10b   :  { %v591_v23 = vmax.f32 %v575_v18, 0.0  ;;  %v576_v24 = vadd.f32 %v923_v34, %v518_v19 }
 0x10c   :  { %v589_v25 = vmax.f32 %v573_v21, 0.0  ;;  %v574_v26 = vadd.f32 %v923_v34, %v516_v22 }
 0x10d   :  { %607 = vst [vmem:[%s994_s5 + $0x50] sm:$0xff] %v591_v23  ;;  %v592_v27 = vmax.f32 %v576_v24, 0.0  ;;  %v712_v28 = vpop.f32.mrb[12].mxu1 }
 0x10e   :  { %605 = vst [vmem:[%s994_s5 + $0x40] sm:$0xff] %v589_v25  ;;  %v590_v29 = vmax.f32 %v574_v26, 0.0  ;;  %v744_v30 = vpop.f32.mrb[12].mxu0  ;;  %v235_v31 = vpop.f32.mrb[13].mxu1 }
 0x10f   :  { %608 = vst [vmem:[%s994_s5 + $0x58] sm:$0xff] %v592_v27  ;;  %v521_v32 = vadd.f32 %v744_v30, %v712_v28  ;;  %v492_v33 = vpop.f32.mrb[13].mxu0  ;;  %v713_v35 = vpop.f32.mrb[14].mxu1 }
 0x110   :  { %606 = vst [vmem:[%s994_s5 + $0x48] sm:$0xff] %v590_v29  ;;  %v519_v36 = vadd.f32 %v492_v33, %v235_v31  ;;  %v745_v37 = vpop.f32.mrb[14].mxu0  ;;  %v238_v38 = vpop.f32.mrb[15].mxu1 }
 0x111   :  { %v579_v39 = vadd.f32 %v923_v34, %v521_v32  ;;  %v522_v40 = vadd.f32 %v745_v37, %v713_v35  ;;  %v495_v41 = vpop.f32.mrb[15].mxu0 }
 0x112   :  { %v577_v42 = vadd.f32 %v923_v34, %v519_v36  ;;  %v520_v43 = vadd.f32 %v495_v41, %v238_v38 }
 0x113   :  { %v595_v44 = vmax.f32 %v579_v39, 0.0  ;;  %v580_v45 = vadd.f32 %v923_v34, %v522_v40 }
 0x114   :  { %v593_v46 = vmax.f32 %v577_v42, 0.0  ;;  %v578_v47 = vadd.f32 %v923_v34, %v520_v43 }
 0x115   :  { %611 = vst [vmem:[%s994_s5 + $0x70] sm:$0xff] %v595_v44  ;;  %v596_v48 = vmax.f32 %v580_v45, 0.0 }
 0x116   :  { %609 = vst [vmem:[%s994_s5 + $0x60] sm:$0xff] %v593_v46  ;;  %v594_v49 = vmax.f32 %v578_v47, 0.0 }
 0x117   :  { %612 = vst [vmem:[%s994_s5 + $0x78] sm:$0xff] %v596_v48 }
 0x118   :  { %610 = vst [vmem:[%s994_s5 + $0x68] sm:$0xff] %v594_v49 }

</bundles_post_ra>
